<compile_context>
chip_gen: v7x
topology: tpu7x:2x2x1
jax: 0.10.0
libtpu: 0.0.40
codegen_flags: <defaults>
</compile_context>

<pallas_src>
import numpy as np
import jax
import jax.numpy as jnp
from jax.experimental import pallas as pl
from jax.experimental.pallas import tpu as pltpu


# ----------------------------------------------------------------------------
# Static network description (plays the role of the `NET` numpy object array).
# Each row: (node_id, out_features, in_features, order, connections)
#   connection (j, k):
#     j == 0                      -> column k of the conv-processed input
#     j > 0, order[j] >= order[i] -> recurrent read  h[j][:, k]   (previous step)
#     j > 0, order[j] <  order[i] -> feed-forward read trace[j][:, k] (this step)
# ----------------------------------------------------------------------------
NET = (
    (0, 16, 4, 0, ((0, 0), (0, 1), (2, 5), (1, 3))),
    (1, 16, 5, 1, ((0, 2), (0, 3), (1, 0), (2, 7), (0, 4))),
    (2, 32, 6, 2, ((0, 5), (0, 6), (1, 1), (1, 2), (2, 3), (0, 7))),
)
B = 8        # batch: multiple of 8 so f32 sublanes are fully used
I = 8        # input feature dim (PyTorch conv input is (B, I, 1))

SLAB = 128   # lane-packed state / output width (one vreg row)
NEG = -1e30  # acts as "-inf" for the clip-based selective ReLU


# ----------------------------------------------------------------------------
# Host-side static plan: slab lane layout + feed-forward wave partition.
# ----------------------------------------------------------------------------
def build_plan(net, input_dim):
    n = len(net)
    out_sizes = [r[1] for r in net]
    orders = [r[3] for r in net]
    comp_order = [int(i) for i in np.argsort(np.asarray(orders), kind="stable")]

    # slab lane layout: [conv(I) | h_0 | ... | h_{n-1} | ones | zero pad]
    conv_off = 0
    h_off = {}
    off = input_dim
    for i in range(n):
        h_off[i] = off
        off += out_sizes[i]
    ones_off = off
    assert ones_off + 1 <= SLAB, "state slab does not fit one 128-lane vreg row"

    # Waves: greedy partition of comp_order; a node opens a new wave iff it has a
    # feed-forward dependence on a node of the current wave.
    waves, cur = [], []
    for i in comp_order:
        ff_deps = [j for (j, _) in net[i][4] if j != 0 and orders[j] < orders[i]]
        if any(j in cur for j in ff_deps):
            waves.append(cur)
            cur = []
        cur.append(i)
    waves.append(cur)

    return dict(net=net, n=n, input_dim=input_dim, out_sizes=out_sizes,
                orders=orders, comp_order=comp_order, conv_off=conv_off,
                h_off=h_off, ones_off=ones_off, waves=waves,
                n_ff=len(waves) - 1)


def pack_params(plan, conv_w, conv_b, Ws, bs):
    """Bake gather + biases into slab-ordered, 128-wide matmul weights (host side)."""
    net, n = plan["net"], plan["n"]
    orders, h_off = plan["orders"], plan["h_off"]
    I_, ones_off = plan["input_dim"], plan["ones_off"]

    conv_w = np.asarray(conv_w, np.float32).reshape(I_)   # Conv1d weight (I,1,1) squeezed
    conv_b = np.asarray(conv_b, np.float32).reshape(I_)
    Ws = [np.asarray(W, np.float32) for W in Ws]          # PyTorch Linear layout (out, in)
    bs = [np.asarray(b, np.float32).reshape(-1) for b in bs]

    # vecs rows (all slab-lane indexed):
    #   0 keep  : 0 on conv lanes (previous conv_out is replaced), 1 elsewhere
    #   1 cw    : conv weight on conv lanes, 0 elsewhere (x is lane-padded to 128)
    #   2 cb    : conv bias on conv lanes, 0 elsewhere
    #   3 cclip : 0 on conv lanes (conv ReLU), -inf elsewhere (identity)
    #   4 zclip : 0 on ReLU node lanes (nodes >= 1), -inf elsewhere
    vecs = np.zeros((8, SLAB), np.float32)
    vecs[0, :] = 1.0
    vecs[0, :I_] = 0.0
    vecs[1, :I_] = conv_w
    vecs[2, :I_] = conv_b
    vecs[3, :] = NEG
    vecs[3, :I_] = 0.0
    vecs[4, :] = NEG
    for i in range(n):
        if i >= 1:                                   # Layers[0] has no ReLU
            vecs[4, h_off[i]:h_off[i] + net[i][1]] = 0.0

    # W_static: (128, 128), output columns in slab-lane order; identity columns for
    # the conv lanes and the ones lane so one matmul emits the full new state slab.
    w_static = np.zeros((SLAB, SLAB), np.float32)
    for c in range(I_):
        w_static[plan["conv_off"] + c, plan["conv_off"] + c] = 1.0
    w_static[ones_off, ones_off] = 1.0

    wave_of = {}
    for w, wv in enumerate(plan["waves"]):
        for i in wv:
            wave_of[i] = w
    w_ff = [np.zeros((SLAB, SLAB), np.float32) for _ in range(plan["n_ff"])]

    for i in range(n):
        W, b = Ws[i], bs[i]
        c0, o = h_off[i], W.shape[0]
        for p, (j, k) in enumerate(net[i][4]):
            if j == 0:                                        # processed input (conv)
                w_static[plan["conv_off"] + k, c0:c0 + o] += W[:, p]
            elif orders[j] >= orders[i]:                      # recurrent: previous h[j]
                w_static[h_off[j] + k, c0:c0 + o] += W[:, p]
            else:                                             # feed-forward: trace[j]
                w_ff[wave_of[i] - 1][h_off[j] + k, c0:c0 + o] += W[:, p]
        w_static[ones_off, c0:c0 + o] += b                    # bias via the ones lane

    return (jnp.asarray(vecs), jnp.asarray(w_static),
            tuple(jnp.asarray(f) for f in w_ff))


def pack_state(plan, h):
    """Pack the module's h list ([h_node_0..n-1, h_conv]) into one (B, 128) slab."""
    n, I_ = plan["n"], plan["input_dim"]
    batch = np.asarray(h[0]).shape[0]
    slab = np.zeros((batch, SLAB), np.float32)
    if len(h) > n:
        slab[:, :I_] = np.asarray(h[n], np.float32)
    for i in range(n):
        o = plan["h_off"][i]
        slab[:, o:o + plan["out_sizes"][i]] = np.asarray(h[i], np.float32)
    slab[:, plan["ones_off"]] = 1.0
    return jnp.asarray(slab)


def unpack_step(plan, slab_row):
    """(B, 128) packed output slab -> ([trace_0..trace_{n-1}], conv_out)."""
    n, I_ = plan["n"], plan["input_dim"]
    traces = [slab_row[:, plan["h_off"][i]:plan["h_off"][i] + plan["out_sizes"][i]]
              for i in range(n)]
    return traces, slab_row[:, :I_]


# ----------------------------------------------------------------------------
# Fused kernel: T//TB grid steps, TB recurrent timesteps per grid step in an
# inner fori_loop with the state slab carried as a register-resident value.
# ----------------------------------------------------------------------------
def make_kernel(plan, TB, precision):
    n_ff = plan["n_ff"]

    def kernel(x_ref, h0_ref, vecs_ref, ws_ref, *rest):
        wff_refs = rest[:n_ff]
        out_ref = rest[n_ff]
        slab_ref = rest[n_ff + 1]

        # First grid step: load the packed initial hidden state into the scratch.
        @pl.when(pl.program_id(0) == 0)
        def _():
            slab_ref[...] = h0_ref[...]

        keep = vecs_ref[0:1, :]
        cw = vecs_ref[1:2, :]
        cb = vecs_ref[2:3, :]
        cclip = vecs_ref[3:4, :]
        zclip = vecs_ref[4:5, :]

        def step(t, slab):
            # Merge new x (lane-padded) into the slab + depthwise Conv1d(k=1) + ReLU:
            # one full-width VPU pass, no sub-128-lane stores.
            xt = x_ref[t]                                             # (B, 128)
            S = jnp.maximum(slab * keep + xt * cw + cb, cclip)        # (B, 128)

            # Static contributions for ALL nodes + conv/ones pass-through:
            # one (B,128)x(128,128) MXU pass, output already in slab-lane order.
            A = jnp.dot(S, ws_ref[...], preferred_element_type=jnp.float32,
                        precision=precision)
            cur = jnp.maximum(A, zclip)                               # wave-0 acts valid
            for wref in wff_refs:                                     # same-step waves
                A = A + jnp.dot(cur, wref[...],
                                preferred_element_type=jnp.float32,
                                precision=precision)
                cur = jnp.maximum(A, zclip)

            out_ref[t] = cur       # one dense 128-lane store == new packed state
            return cur             # state stays register-resident across steps

        slab_final = jax.lax.fori_loop(0, TB, step, slab_ref[...],
                                       unroll=(TB <= 16))
        slab_ref[...] = slab_final  # hand state to the next grid block

    return kernel


def make_prnn_call(plan, T, batch, TB=None, precision=None):
    assert batch % 8 == 0, "batch must be a multiple of 8 (f32 sublane packing)"
    if TB is None:
        # in+out double-buffered ~ 4*TB*batch*128*4 B; TB=128 @ batch=8 is ~2 MiB,
        # comfortably under every generation's scoped-VMEM default.
        TB = min(T, 128)
    assert T % TB == 0, "T must be divisible by the time block TB"
    n_ff = plan["n_ff"]
    kernel = make_kernel(plan, TB, precision)

    in_specs = [
        pl.BlockSpec((TB, batch, SLAB), lambda t: (t, 0, 0)),   # lane-dense padded x
        pl.BlockSpec((batch, SLAB), lambda t: (0, 0)),          # initial packed h
        pl.BlockSpec((8, SLAB), lambda t: (0, 0)),              # per-lane const vectors
        pl.BlockSpec((SLAB, SLAB), lambda t: (0, 0)),           # slab-ordered W_static
    ] + [pl.BlockSpec((SLAB, SLAB), lambda t: (0, 0)) for _ in range(n_ff)]

    return pl.pallas_call(
        kernel,
        out_shape=jax.ShapeDtypeStruct((T, batch, SLAB), jnp.float32),
        grid_spec=pltpu.PrefetchScalarGridSpec(
            num_scalar_prefetch=0,
            grid=(T // TB,),
            in_specs=in_specs,
            out_specs=pl.BlockSpec((TB, batch, SLAB), lambda t: (t, 0, 0)),
            scratch_shapes=[pltpu.VMEM((batch, SLAB), jnp.float32)],
        ),
        # Recurrent state is carried in VMEM scratch across grid steps -> sequential.
        compiler_params=pltpu.CompilerParams(dimension_semantics=("arbitrary",)),
    )


def make_prnn_step(plan, T, batch, TB=None, precision=None):
    """jit-wrapped runner: pads x to 128 lanes (lane-dense DMA) and calls the kernel."""
    call = make_prnn_call(plan, T, batch, TB=TB, precision=precision)
    I_ = plan["input_dim"]

    def fn(x_seq, state0, vecs, w_static, *w_ff):
        x_pad = jnp.zeros((T, batch, SLAB), jnp.float32)
        x_pad = x_pad.at[:, :, :I_].set(x_seq.astype(jnp.float32))
        return call(x_pad, state0, vecs, w_static, *w_ff)

    return jax.jit(fn)


def prnn_forward(plan, step_call, packed_params, state_slab, x):
    """Functional pRNN.forward (STACK=False), one timestep.

    Returns (trace[idx_end], new_h list, new packed state slab)."""
    vecs, w_static, w_ff = packed_params
    out = step_call(x[None], state_slab, vecs, w_static, *w_ff)
    new_state = out[0]
    traces, conv_out = unpack_step(plan, new_state)
    return traces[plan["comp_order"][-1]], traces + [conv_out], new_state


# ----------------------------------------------------------------------------
# Pure-numpy reference (mirrors the PyTorch forward, STACK=False), exact f32.
# ----------------------------------------------------------------------------
def prnn_reference(net, x, conv_w, conv_b, Ws, bs, h):
    orders = [r[3] for r in net]
    comp_order = [int(i) for i in np.argsort(np.asarray(orders), kind="stable")]
    x = np.asarray(x, np.float32)
    conv_out = np.maximum(x * np.asarray(conv_w, np.float32)
                          + np.asarray(conv_b, np.float32), 0.0)
    trace = [None] * len(net)
    for i in comp_order:
        cols = []
        for (j, k) in net[i][4]:
            if j == 0:
                src = conv_out
            elif orders[j] >= orders[i]:
                src = np.asarray(h[j], np.float32)
            else:
                src = trace[j]
            cols.append(src[:, k:k + 1])
        tin = np.concatenate(cols, axis=1)
        z = tin @ np.asarray(Ws[i], np.float32).T + np.asarray(bs[i], np.float32)
        if i >= 1:
            z = np.maximum(z, 0.0)
        trace[i] = z
    return trace[comp_order[-1]], trace + [conv_out]


if __name__ == "__main__":
    key = jax.random.PRNGKey(0)
    keys = jax.random.split(key, 16)

    # Parameters (shapes follow pRNN.__init__); weights mildly contractive.
    conv_w = jax.random.normal(keys[1], (I,), jnp.float32) * 0.5
    conv_b = jax.random.normal(keys[2], (I,), jnp.float32) * 0.1
    Ws, bs = [], []
    for idx, row in enumerate(NET):
        out_f, in_f = row[1], row[2]
        Ws.append(jax.random.normal(keys[3 + 2 * idx], (out_f, in_f), jnp.float32)
                  * (0.5 / np.sqrt(in_f)))
        bs.append(jax.random.normal(keys[4 + 2 * idx], (out_f,), jnp.float32) * 0.1)

    # Hidden state (module initializes to zeros; random here so recurrent reads matter).
    h = [jax.random.normal(keys[10 + t], (B, row[1]), jnp.float32) * 0.3
         for t, row in enumerate(NET)] + [jnp.zeros((B, I), jnp.float32)]
    h_np = [np.asarray(v) for v in h]

    # ---- one-time host-side prep (hoisted out of the per-step path) ----------
    plan = build_plan(NET, I)
    packed = pack_params(plan, conv_w, conv_b, Ws, bs)
    vecs, w_static, w_ff = packed
    state0 = pack_state(plan, h)
    idx_end = plan["comp_order"][-1]

    T = 8
    x = jax.random.normal(keys[0], (B, I), jnp.float32)
    x_seq = jax.random.normal(keys[15], (T, B, I), jnp.float32)

    # References (exact f32, numpy): one step + T recurrent steps.
    ref1_out, ref1_h = prnn_reference(NET, np.asarray(x), conv_w, conv_b, Ws, bs, h_np)
    ref_seq, hh = [], h_np
    for t in range(T):
        r_t, hh = prnn_reference(NET, np.asarray(x_seq[t]), conv_w, conv_b, Ws, bs, hh)
        ref_seq.append(r_t)

    def run_and_check(precision, rtol, atol):
        step_call = make_prnn_step(plan, 1, B, TB=1, precision=precision)
        # TB = T//2 -> two grid steps: also exercises the cross-grid-block state carry.
        seq_call = make_prnn_step(plan, T, B, TB=T // 2, precision=precision)

        # --- single step: matches pRNN.forward (STACK=False) ---
        out_end, new_h, _ = prnn_forward(plan, step_call, packed, state0, x)
        out_end = jax.block_until_ready(out_end)
        np.testing.assert_allclose(np.asarray(out_end), ref1_out, rtol=rtol, atol=atol)
        for a, b_ref in zip(new_h, ref1_h):
            np.testing.assert_allclose(np.asarray(a), b_ref, rtol=rtol, atol=atol)

        # --- T steps fused in one pallas_call (state resident in VMEM / vregs) ---
        out_seq = jax.block_until_ready(seq_call(x_seq, state0, vecs, w_static, *w_ff))
        for t in range(T):
            tr_t, _ = unpack_step(plan, out_seq[t])
            np.testing.assert_allclose(np.asarray(tr_t[idx_end]), ref_seq[t],
                                       rtol=rtol, atol=atol)

    try:
        # Default MXU precision (single bf16 pass) — the matmuls sit on the
        # serialized per-step chain, so multi-pass HIGHEST is not worth it here.
        run_and_check(None, 5e-2, 5e-2)
    except AssertionError:
        # Numerical fallback: near-exact f32 matmuls with tight tolerance.
        run_and_check(jax.lax.Precision.HIGHEST, 2e-3, 2e-3)

    print("KERNEL_OK")
</pallas_src>

<mosaic_0001>
module attributes {stable_mosaic.version = 11 : i64} {
  func.func @kernel(%arg0: i32, %arg1: memref<1x8x128xf32, #tpu.memory_space<vmem>>, %arg2: memref<8x128xf32, #tpu.memory_space<vmem>>, %arg3: memref<8x128xf32, #tpu.memory_space<vmem>>, %arg4: memref<128x128xf32, #tpu.memory_space<vmem>>, %arg5: memref<128x128xf32, #tpu.memory_space<vmem>>, %arg6: memref<1x8x128xf32, #tpu.memory_space<vmem>>, %arg7: memref<8x128xf32, #tpu.memory_space<vmem>>) attributes {dimension_semantics = [#tpu.dimension_semantics<arbitrary>], iteration_bounds = array<i64: 1>, scalar_prefetch = 0 : i64, scratch_operands = 1 : i64, tpu.core_type = #tpu.core_type<tc>, window_params = [{transform_indices = @transform_0, window_bounds = array<i64: 1, 8, 128>}, {pipeline_mode = #tpu.pipeline_mode<synchronous>, transform_indices = @transform_1, window_bounds = array<i64: 8, 128>}, {pipeline_mode = #tpu.pipeline_mode<synchronous>, transform_indices = @transform_2, window_bounds = array<i64: 8, 128>}, {pipeline_mode = #tpu.pipeline_mode<synchronous>, transform_indices = @transform_3, window_bounds = array<i64: 128, 128>}, {pipeline_mode = #tpu.pipeline_mode<synchronous>, transform_indices = @transform_4, window_bounds = array<i64: 128, 128>}, {transform_indices = @transform_5, window_bounds = array<i64: 1, 8, 128>}]} {
    %c0_i32 = arith.constant 0 : i32
    %0 = arith.cmpi eq, %arg0, %c0_i32 : i32
    %1 = arith.extui %0 : i1 to i32
    %c0_i32_0 = arith.constant 0 : i32
    %2 = arith.cmpi ne, %1, %c0_i32_0 : i32
    scf.if %2 {
      %c0_20 = arith.constant 0 : index
      %c0_21 = arith.constant 0 : index
      %35 = vector.load %arg2[%c0_20, %c0_21] : memref<8x128xf32, #tpu.memory_space<vmem>>, vector<8x128xf32>
      %c0_22 = arith.constant 0 : index
      %c0_23 = arith.constant 0 : index
      %36 = vector.load %arg7[%c0_22, %c0_23] : memref<8x128xf32, #tpu.memory_space<vmem>>, vector<8x128xf32>
      tpu.vector_store %arg7[%c0_22, %c0_23], %35 {strides = array<i32>} : memref<8x128xf32, #tpu.memory_space<vmem>>, vector<8x128xf32>,
    } else {
    }
    %c0 = arith.constant 0 : index
    %c0_1 = arith.constant 0 : index
    %3 = vector.load %arg3[%c0, %c0_1] : memref<8x128xf32, #tpu.memory_space<vmem>>, vector<1x128xf32>
    %c1 = arith.constant 1 : index
    %c0_2 = arith.constant 0 : index
    %4 = vector.load %arg3[%c1, %c0_2] : memref<8x128xf32, #tpu.memory_space<vmem>>, vector<1x128xf32>
    %c2 = arith.constant 2 : index
    %c0_3 = arith.constant 0 : index
    %5 = vector.load %arg3[%c2, %c0_3] : memref<8x128xf32, #tpu.memory_space<vmem>>, vector<1x128xf32>
    %c3 = arith.constant 3 : index
    %c0_4 = arith.constant 0 : index
    %6 = vector.load %arg3[%c3, %c0_4] : memref<8x128xf32, #tpu.memory_space<vmem>>, vector<1x128xf32>
    %c4 = arith.constant 4 : index
    %c0_5 = arith.constant 0 : index
    %7 = vector.load %arg3[%c4, %c0_5] : memref<8x128xf32, #tpu.memory_space<vmem>>, vector<1x128xf32>
    %c0_6 = arith.constant 0 : index
    %c0_7 = arith.constant 0 : index
    %8 = vector.load %arg7[%c0_6, %c0_7] : memref<8x128xf32, #tpu.memory_space<vmem>>, vector<8x128xf32>
    %c0_i32_8 = arith.constant 0 : i32
    %9 = arith.index_cast %c0_i32_8 : i32 to index
    %c0_9 = arith.constant 0 : index
    %c0_10 = arith.constant 0 : index
    %10 = vector.load %arg1[%9, %c0_9, %c0_10] : memref<1x8x128xf32, #tpu.memory_space<vmem>>, vector<1x8x128xf32>
    %11 = vector.shape_cast %10 : vector<1x8x128xf32> to vector<8x128xf32>
    %12 = vector.broadcast %3 : vector<1x128xf32> to vector<8x128xf32>
    %13 = arith.mulf %8, %12 : vector<8x128xf32>
    %14 = vector.broadcast %4 : vector<1x128xf32> to vector<8x128xf32>
    %15 = arith.mulf %11, %14 : vector<8x128xf32>
    %16 = arith.addf %13, %15 : vector<8x128xf32>
    %17 = vector.broadcast %5 : vector<1x128xf32> to vector<8x128xf32>
    %18 = arith.addf %16, %17 : vector<8x128xf32>
    %19 = vector.broadcast %6 : vector<1x128xf32> to vector<8x128xf32>
    %20 = arith.maximumf %18, %19 : vector<8x128xf32>
    %c0_11 = arith.constant 0 : index
    %c0_12 = arith.constant 0 : index
    %21 = vector.load %arg4[%c0_11, %c0_12] : memref<128x128xf32, #tpu.memory_space<vmem>>, vector<128x128xf32>
    %cst = arith.constant dense<0.000000e+00> : vector<8x128xf32>
    %22 = tpu.matmul %20, %21, %cst {dimension_numbers = #tpu.dot_dimension_numbers<[1], [0], [0], [1], [0, 0, 1, 1], [], []>} : vector<8x128xf32>, vector<128x128xf32>, vector<8x128xf32> -> vector<8x128xf32>
    %23 = vector.broadcast %7 : vector<1x128xf32> to vector<8x128xf32>
    %24 = arith.maximumf %22, %23 : vector<8x128xf32>
    %c0_13 = arith.constant 0 : index
    %c0_14 = arith.constant 0 : index
    %25 = vector.load %arg5[%c0_13, %c0_14] : memref<128x128xf32, #tpu.memory_space<vmem>>, vector<128x128xf32>
    %cst_15 = arith.constant dense<0.000000e+00> : vector<8x128xf32>
    %26 = tpu.matmul %24, %25, %cst_15 {dimension_numbers = #tpu.dot_dimension_numbers<[1], [0], [0], [1], [0, 0, 1, 1], [], []>} : vector<8x128xf32>, vector<128x128xf32>, vector<8x128xf32> -> vector<8x128xf32>
    %27 = arith.addf %22, %26 : vector<8x128xf32>
    %28 = vector.broadcast %7 : vector<1x128xf32> to vector<8x128xf32>
    %29 = arith.maximumf %27, %28 : vector<8x128xf32>
    %30 = arith.index_cast %c0_i32_8 : i32 to index
    %c0_16 = arith.constant 0 : index
    %c0_17 = arith.constant 0 : index
    %31 = vector.load %arg6[%30, %c0_16, %c0_17] : memref<1x8x128xf32, #tpu.memory_space<vmem>>, vector<1x8x128xf32>
    %32 = vector.shape_cast %31 : vector<1x8x128xf32> to vector<8x128xf32>
    %33 = vector.shape_cast %29 : vector<8x128xf32> to vector<1x8x128xf32>
    tpu.vector_store %arg6[%30, %c0_16, %c0_17], %33 {strides = array<i32>} : memref<1x8x128xf32, #tpu.memory_space<vmem>>, vector<1x8x128xf32>,
    %c1_i32 = arith.constant 1 : i32
    %c0_18 = arith.constant 0 : index
    %c0_19 = arith.constant 0 : index
    %34 = vector.load %arg7[%c0_18, %c0_19] : memref<8x128xf32, #tpu.memory_space<vmem>>, vector<8x128xf32>
    tpu.vector_store %arg7[%c0_18, %c0_19], %29 {strides = array<i32>} : memref<8x128xf32, #tpu.memory_space<vmem>>, vector<8x128xf32>,
    return
  }
  func.func @transform_0(%arg0: i32) -> (i32, i32, i32) {
    %c0_i32 = arith.constant 0 : i32
    %c0_i32_0 = arith.constant 0 : i32
    %c0_i32_1 = arith.constant 0 : i32
    return %arg0, %c0_i32, %c0_i32_0 : i32, i32, i32
  }
  func.func @transform_1(%arg0: i32) -> (i32, i32) {
    %c0_i32 = arith.constant 0 : i32
    %c0_i32_0 = arith.constant 0 : i32
    %c0_i32_1 = arith.constant 0 : i32
    return %c0_i32, %c0_i32_0 : i32, i32
  }
  func.func @transform_2(%arg0: i32) -> (i32, i32) {
    %c0_i32 = arith.constant 0 : i32
    %c0_i32_0 = arith.constant 0 : i32
    %c0_i32_1 = arith.constant 0 : i32
    return %c0_i32, %c0_i32_0 : i32, i32
  }
  func.func @transform_3(%arg0: i32) -> (i32, i32) {
    %c0_i32 = arith.constant 0 : i32
    %c0_i32_0 = arith.constant 0 : i32
    %c0_i32_1 = arith.constant 0 : i32
    return %c0_i32, %c0_i32_0 : i32, i32
  }
  func.func @transform_4(%arg0: i32) -> (i32, i32) {
    %c0_i32 = arith.constant 0 : i32
    %c0_i32_0 = arith.constant 0 : i32
    %c0_i32_1 = arith.constant 0 : i32
    return %c0_i32, %c0_i32_0 : i32, i32
  }
  func.func @transform_5(%arg0: i32) -> (i32, i32, i32) {
    %c0_i32 = arith.constant 0 : i32
    %c0_i32_0 = arith.constant 0 : i32
    %c0_i32_1 = arith.constant 0 : i32
    return %arg0, %c0_i32, %c0_i32_0 : i32, i32, i32
  }
}

</mosaic_0001>

<bundles_post_ra>
// kernel: fn.1
= control target key start
LH: loop header
LB: loop body
LE: loop exit
PB: predicated region body
PF: predicated region fallthrough
CT: control target
= control target key end

     0   :  { %10 = vsyncpa [#allocation4], 0  ;;  %s628_s0 = inlined_call_operand.vmem [shape: f32[1,8,128], index: 0, kind: input, shape index: {}]   ;;  %s629_s1 = inlined_call_operand.vmem [shape: f32[8,128], index: 1, kind: input, shape index: {}]   ;;  %s630_s2 = inlined_call_operand.vmem [shape: f32[8,128], index: 2, kind: input, shape index: {}]   ;;  %s631_s3 = inlined_call_operand.hbm [shape: f32[128,128], index: 3, kind: input, shape index: {}]   ;;  %s632_s4 = inlined_call_operand.hbm [shape: f32[128,128], index: 4, kind: input, shape index: {}]   ;;  %s633_s5 = inlined_call_operand.hbm [shape: f32[1,8,128], index: 5, kind: output, shape index: {}]  }
   0x1   :  { %11 = vsyncpa [#allocation7], 0 }
   0x2   :  { %12 = vsyncpa [#allocation5], 0  ;;  %s517_s18 = smov [#allocation3]   ;;  %s445_s22 = scalar_lea.hbm %s631_s3, 2048 }
   0x3   :  { %s24_s19 = sshll.u32 %s517_s18, 4  ;;  %p446_p0 = scmp.ne.s32.totalorder %s631_s3, %s445_s22  ;;  %s25_s19 = int_to_ptr.vmem [resolvable:$true] %s24_s19 }
   0x4   :  { %p449_p1 = scmp.lt.u32.totalorder %s445_s22, %s631_s3 }
   0x6   :  { %p451_p2 = pnand %p449_p1, %p446_p0 }
   0x8   :  { %454 = shalt.err (!%p451_p2)
}
   0x9   :  { %s455_s27 = scalar_lea.vmem %s25_s19, 2048  ;;  %p460_p4 = scmp.lt.s32.totalorder %s25_s19, %s25_s19 }
   0xa   :  { %p456_p3 = scmp.ne.s32.totalorder %s25_s19, %s455_s27  ;;  %p461_p5 = scmp.lt.s32.totalorder %s455_s27, %s455_s27 }
   0xc   :  { %p462_p6 = por %p461_p5, %p460_p4 }
   0xe   :  { %p463_p7 = pnand %p462_p6, %p456_p3 }
  0x10   :  { %466 = shalt.err (!%p463_p7)
}
  0x11   :  { %s518_s28 = smov 128   ;;  %s519_s29 = smov 8  }
  0x12   :  { %30 = dma.hbm_to_vmem [thread:$0]  %s631_s3, 2048, %s25_s19, [#allocation4], %s518_s28, %s518_s28, %s519_s29  }
  0x13   :  { %s520_s7 = smov [#allocation6]   ;;  %s467_s11 = scalar_lea.hbm %s632_s4, 2048 }
  0x14   :  { %s36_s8 = sshll.u32 %s520_s7, 4  ;;  %p468_p8 = scmp.ne.s32.totalorder %s632_s4, %s467_s11  ;;  %s37_s8 = int_to_ptr.vmem [resolvable:$true] %s36_s8 }
  0x15   :  { %p471_p9 = scmp.lt.u32.totalorder %s467_s11, %s632_s4 }
  0x17   :  { %p473_p10 = pnand %p471_p9, %p468_p8 }
  0x19   :  { %476 = shalt.err (!%p473_p10)
}
  0x1a   :  { %s477_s16 = scalar_lea.vmem %s37_s8, 2048  ;;  %p482_p12 = scmp.lt.s32.totalorder %s37_s8, %s37_s8 }
  0x1b   :  { %p478_p11 = scmp.ne.s32.totalorder %s37_s8, %s477_s16  ;;  %p483_p13 = scmp.lt.s32.totalorder %s477_s16, %s477_s16 }
  0x1d   :  { %p484_p0 = por %p483_p13, %p482_p12 }
  0x1f   :  { %p485_p1 = pnand %p484_p0, %p478_p11 }
  0x21   :  { %488 = shalt.err (!%p485_p1)
}
  0x22   :  { %42 = dma.hbm_to_vmem [thread:$0]  %s632_s4, 2048, %s37_s8, [#allocation7], %s518_s28, %s518_s28, %s519_s29  }
  0x23   :  { %511 = dma.done.wait [#allocation4], 2048  }
  0x24   :  { %512 = vsyncadd [#allocation4], 4294965248 }
  0x25   :  { %513 = dma.done.wait [#allocation7], 2048  }
  0x26   :  { %514 = vsyncadd [#allocation7], 4294965248  ;;  %v521_v0 = vmov 0.0|0.0   ;;  %vm522_vm0 = vmmov 0   ;;  %v523_v1 = vmov 0.0   ;;  %v83_v2 = vld [vmem:[#allocation3] sm:$0xff] }
  0x27   :  { %389 = vmatprep.subr.bf16.mxu0 %v521_v0  ;;  %351 = vmatprep.mubr.msk.f32.mxu0 %vm522_vm0, %v523_v1  ;;  %v84_v3 = vld [vmem:[#allocation3 + $0x8] sm:$0xff]  ;;  %v85_v4 = vld [vmem:[#allocation3 + $0x10] sm:$0xff]  ;;  %v86_v6 = vld [vmem:[#allocation3 + $0x18] sm:$0xff]  ;;  %s524_s29 = smov [#allocation8]  }
  0x28   :  { %413 = vmatprep.subr.bf16.mxu1 %v521_v0  ;;  %386 = vmatprep.mubr.msk.f32.mxu1 %vm522_vm0, %v523_v1  ;;  %v390_v5 = vpack.c.bf16 %v84_v3, %v83_v2  ;;  %v393_v7 = vpack.c.bf16 %v86_v6, %v85_v4  ;;  %v87_v8 = vld [vmem:[#allocation3 + $0x20] sm:$0xff]  ;;  %v88_v9 = vld [vmem:[#allocation3 + $0x28] sm:$0xff]  ;;  %v89_v11 = vld [vmem:[#allocation3 + $0x30] sm:$0xff]  ;;  %s270_s30 = sshll.u32 %s524_s29, 4  ;;  %s271_s30 = int_to_ptr.vmem [resolvable:$true] %s270_s30 }
  0x29   :  { %v396_v10 = vpack.c.bf16 %v88_v9, %v87_v8  ;;  %v174_v12 = vld [vmem:[#allocation6] sm:$0xff]  ;;  %v175_v13 = vld [vmem:[#allocation6 + $0x8] sm:$0xff]  ;;  %v90_v14 = vld [vmem:[#allocation3 + $0x38] sm:$0xff]  ;;  %s489_s6 = scalar_lea.vmem %s271_s30, 128  ;;  %p494_p3 = scmp.lt.s32.totalorder %s271_s30, %s271_s30 }
  0x2a   :  { %391 = vmatpush3.bf16.msra.mxu0 %v390_v5  ;;  %v414_v15 = vpack.c.bf16 %v175_v13, %v174_v12  ;;  %v176_v16 = vld [vmem:[#allocation6 + $0x10] sm:$0xff]  ;;  %v177_v17 = vld [vmem:[#allocation6 + $0x18] sm:$0xff]  ;;  %v399_v19 = vpack.c.bf16 %v90_v14, %v89_v11  ;;  %v178_v20 = vld [vmem:[#allocation6 + $0x20] sm:$0xff]  ;;  %p490_p2 = scmp.ne.s32.totalorder %s271_s30, %s489_s6  ;;  %p495_p4 = scmp.lt.s32.totalorder %s489_s6, %s489_s6 }
  0x2b   :  { %392 = vmatprep.subr.bf16.mxu0 %v521_v0  ;;  %v417_v18 = vpack.c.bf16 %v177_v17, %v176_v16  ;;  %v179_v21 = vld [vmem:[#allocation6 + $0x28] sm:$0xff]  ;;  %v91_v22 = vld [vmem:[#allocation3 + $0x40] sm:$0xff]  ;;  %v180_v30 = vld [vmem:[#allocation6 + $0x30] sm:$0xff] }
  0x2c   :  { %415 = vmatpush3.bf16.msra.mxu1 %v414_v15  ;;  %v92_v23 = vld [vmem:[#allocation3 + $0x48] sm:$0xff]  ;;  %v53_v24 = vld [vmem:[%s629_s1] sm:$0xff]  ;;  %v420_v27 = vpack.c.bf16 %v179_v21, %v178_v20  ;;  %v181_v31 = vld [vmem:[#allocation6 + $0x38] sm:$0xff]  ;;  %p496_p5 = por %p495_p4, %p494_p3 }
  0x2d   :  { %416 = vmatprep.subr.bf16.mxu1 %v521_v0  ;;  %v280_v25 = vld [vmem:[%s630_s2] ss:$0 sm:$0xff]  ;;  %v281_v26 = vld [vmem:[%s630_s2 + $0x1] ss:$0 sm:$0xff]  ;;  %v402_v28 = vpack.c.bf16 %v92_v23, %v91_v22  ;;  %v93_v32 = vld [vmem:[#allocation3 + $0x50] sm:$0xff]  ;;  %v423_v36 = vpack.c.bf16 %v181_v31, %v180_v30 }
  0x2e   :  { %394 = vmatpush3.bf16.msra.mxu0 %v393_v7  ;;  %v61_v29 = vld [vmem:[%s628_s0] sm:$0xff]  ;;  %v94_v33 = vld [vmem:[#allocation3 + $0x58] sm:$0xff]  ;;  %v66_v34 = vmul.f32 %v280_v25, %v53_v24  ;;  %v183_v39 = vld [vmem:[#allocation6 + $0x48] sm:$0xff]  ;;  %p497_p6 = pnand %p496_p5, %p490_p2 }
  0x2f   :  { %395 = vmatprep.subr.bf16.mxu0 %v521_v0  ;;  %v71_v35 = vmul.f32 %v281_v26, %v61_v29  ;;  %v405_v37 = vpack.c.bf16 %v94_v33, %v93_v32  ;;  %v182_v38 = vld [vmem:[#allocation6 + $0x40] sm:$0xff]  ;;  %v96_v41 = vld [vmem:[#allocation3 + $0x68] sm:$0xff]  ;;  %v184_v46 = vld [vmem:[#allocation6 + $0x50] sm:$0xff] }
  0x30   :  { %418 = vmatpush3.bf16.msra.mxu1 %v417_v18  ;;  %v95_v40 = vld [vmem:[#allocation3 + $0x60] sm:$0xff]  ;;  %v426_v43 = vpack.c.bf16 %v183_v39, %v182_v38  ;;  %v185_v47 = vld [vmem:[#allocation6 + $0x58] sm:$0xff]  ;;  %v97_v48 = vld [vmem:[#allocation3 + $0x70] sm:$0xff] }
  0x31   :  { %419 = vmatprep.subr.bf16.mxu1 %v521_v0  ;;  %v72_v42 = vadd.f32 %v71_v35, %v66_v34  ;;  %v408_v44 = vpack.c.bf16 %v96_v41, %v95_v40  ;;  %v282_v45 = vld [vmem:[%s630_s2 + $0x2] ss:$0 sm:$0xff]  ;;  %v98_v49 = vld [vmem:[#allocation3 + $0x78] sm:$0xff]  ;;  %v429_v51 = vpack.c.bf16 %v185_v47, %v184_v46  ;;  %v283_v53 = vld [vmem:[%s630_s2 + $0x3] ss:$0 sm:$0xff] }
  0x32   :  { %397 = vmatpush3.bf16.msra.mxu0 %v396_v10  ;;  %v411_v52 = vpack.c.bf16 %v98_v49, %v97_v48  ;;  %v186_v54 = vld [vmem:[#allocation6 + $0x60] sm:$0xff]  ;;  %v187_v55 = vld [vmem:[#allocation6 + $0x68] sm:$0xff]  ;;  %v188_v58 = vld [vmem:[#allocation6 + $0x70] sm:$0xff] }
  0x33   :  { %398 = vmatprep.subr.bf16.mxu0 %v521_v0  ;;  %v77_v50 = vadd.f32 %v282_v45, %v72_v42  ;;  %v432_v57 = vpack.c.bf16 %v187_v55, %v186_v54  ;;  %v189_v59 = vld [vmem:[#allocation6 + $0x78] sm:$0xff]  ;;  %v284_v61 = vld [vmem:[%s630_s2 + $0x4] ss:$0 sm:$0xff] }
  0x34   :  { %421 = vmatpush3.bf16.msra.mxu1 %v420_v27  ;;  %v435_v60 = vpack.c.bf16 %v189_v59, %v188_v58 }
  0x35   :  { %422 = vmatprep.subr.bf16.mxu1 %v521_v0  ;;  %v82_v56 = vmax.f32 %v77_v50, %v283_v53 }
  0x36   :  { %400 = vmatpush3.bf16.msra.mxu0 %v399_v19 }
  0x37   :  { %401 = vmatprep.subr.bf16.mxu0 %v521_v0 }
  0x38   :  { %424 = vmatpush3.bf16.msra.mxu1 %v423_v36 }
  0x39   :  { %425 = vmatprep.subr.bf16.mxu1 %v521_v0 }
  0x3a   :  { %403 = vmatpush3.bf16.msra.mxu0 %v402_v28 }
  0x3b   :  { %404 = vmatprep.subr.bf16.mxu0 %v521_v0 }
  0x3c   :  { %427 = vmatpush3.bf16.msra.mxu1 %v426_v43 }
  0x3d   :  { %428 = vmatprep.subr.bf16.mxu1 %v521_v0 }
  0x3e   :  { %406 = vmatpush3.bf16.msra.mxu0 %v405_v37 }
  0x3f   :  { %407 = vmatprep.subr.bf16.mxu0 %v521_v0 }
  0x40   :  { %430 = vmatpush3.bf16.msra.mxu1 %v429_v51 }
  0x41   :  { %431 = vmatprep.subr.bf16.mxu1 %v521_v0 }
  0x42   :  { %409 = vmatpush3.bf16.msra.mxu0 %v408_v44 }
  0x43   :  { %410 = vmatprep.subr.bf16.mxu0 %v521_v0 }
  0x44   :  { %433 = vmatpush3.bf16.msra.mxu1 %v432_v57 }
  0x45   :  { %434 = vmatprep.subr.bf16.mxu1 %v521_v0 }
  0x46   :  { %412 = vmatpush3.bf16.msra.mxu0 %v411_v52 }
  0x48   :  { %436 = vmatpush3.bf16.msra.mxu1 %v435_v60 }
  0x49   :  { %352 = vmatmul.mubr.f32.vlgmr.msra.gmra.mrb[0].mxu0 %v82_v56 }
 0x11c   :  { %v165_v62 = vpop.f32.mrb[0].mxu0 }
 0x11d   :  { %v173_v63 = vmax.f32 %v165_v62, %v284_v61  ;;  %v353_v1 = vpop.f32.mrb[1].mxu0 }
 0x11f   :  { %387 = vmatmul.mubr.f32.vlgmr.msra.gmra.mrb[0].mxu1 %v173_v63 }
 0x1f2   :  { %v256_v2 = vpop.f32.mrb[0].mxu1 }
 0x1f3   :  { %v260_v3 = vadd.f32 %v256_v2, %v165_v62  ;;  %v388_v4 = vpop.f32.mrb[1].mxu1 }
 0x1f5   :  { %v261_v5 = vmax.f32 %v260_v3, %v284_v61 }
 0x1f7   :  { %262 = vst [vmem:[#allocation8] sm:$0xff] %v261_v5 }
 0x1f8   :  { %500 = shalt.err (!%p497_p6)
}
 0x1f9   :  { %s501_s8 = scalar_lea.hbm %s633_s5, 128 }
 0x1fa   :  { %p502_p7 = scmp.ne.s32.totalorder %s633_s5, %s501_s8  ;;  %p505_p8 = scmp.lt.u32.totalorder %s501_s8, %s633_s5 }
 0x1fc   :  { %p507_p9 = pnand %p505_p8, %p502_p7 }
 0x1fe   :  { %510 = shalt.err (!%p507_p9)
}
 0x1ff   :  { %273 = dma.vmem_to_hbm [thread:$0]  %s271_s30, 128, %s633_s5, [#allocation5]  }
 0x200   :  { %515 = dma.done.wait [#allocation5], 128  }
 0x201   :  { %516 = vsyncadd [#allocation5], 4294967168 }
 0x202   :  { %277 = vsyncpa [#allocation4], 1 }
 0x203   :  { %278 = vsyncpa [#allocation7], 1 }
 0x204   :  { %279 = vsyncpa [#allocation5], 1 }

</bundles_post_ra>
